<compile_context>
chip_gen: v7x
topology: tpu7x:2x2x1
jax: 0.10.0
libtpu: 0.0.40
codegen_flags: <defaults>
</compile_context>

<pallas_src>
import functools

import jax
import jax.numpy as jnp
from jax.experimental import pallas as pl
from jax.experimental.pallas import tpu as pltpu


def _round_up(x, m):
    return ((x + m - 1) // m) * m


def _vmem_limit_bytes():
    """Generation-aware VMEM limit: capacity - 8 MiB headroom, capped at 100 MiB."""
    cap = 64 * 1024 * 1024  # conservative default (v7x per-core VMEM)
    try:
        info = pltpu.get_tpu_info()
        cap = int(getattr(info, "vmem_capacity_bytes", cap) or cap)
    except Exception:
        pass
    return min(cap - 8 * 1024 * 1024, 100 * 1024 * 1024)


def _pick_tile_rows(n_rows, d_model, x_bytes, w1_bytes, vmem_limit, requested):
    """Largest MXU-friendly row tile that fits the per-step VMEM budget."""
    if requested is None:
        # Resident: W1 (pipeline allocates 2 buffers even for a constant index_map)
        # plus b1/w2/b2 (tiny).
        resident = 2 * d_model * d_model * w1_bytes + 8 * d_model * 4
        budget = int(vmem_limit * 0.75) - resident          # 25% headroom for scratch
        # Per row: double-buffered x tile + in-kernel bf16 copy of x + f32 h
        # intermediate + (small) output buffers.
        per_row = (2 * x_bytes + 2 + 4) * d_model + 2 * 128 * 4
        tm = budget // max(per_row, 1)
        tm = max(256, min(2048, (tm // 256) * 256))
    else:
        tm = int(requested)
    # Clamp for small N; ragged N is handled by Pallas boundary-block padding
    # (garbage padded rows stay row-independent and their output is discarded).
    tm = min(tm, _round_up(n_rows, 8))
    if n_rows > 8:
        # Guarantee >=2 grid steps so ("parallel",) can shard across both v7x TCs.
        tm = min(tm, _round_up(pl.cdiv(n_rows, 2), 8))
    return max(tm, 8)


def _mlp_head_kernel(x_ref, w1_ref, b1_ref, w2_ref, b2_ref, o_ref):
    # x_ref : [TM, D]  activation rows (f32 or bf16)
    # w1_ref: [D, D]   dense.weight.T ([in, out]); bf16 (default) or f32; grid-invariant
    # b1_ref: [1, D]   dense.bias, f32
    # w2_ref: [1, D]   out_proj.weight as a lane row, f32
    # b2_ref: [1]      out_proj.bias, f32 scalar in SMEM
    # o_ref : [TM, 1]  output column
    x = x_ref[...].astype(w1_ref.dtype)                                # VPU cast (no-op if already matching)
    h = jnp.dot(x, w1_ref[...], preferred_element_type=jnp.float32)    # MXU, f32 accumulate
    h = jnp.tanh(h + b1_ref[...])                                      # f32 bias + tanh (EUP)
    # Second projection (D -> 1) on the VPU (mul) + XLU (lane reduce); keeps MXU free.
    out = jnp.sum(h * w2_ref[...], axis=-1, keepdims=True)             # [TM, 1], f32
    # out_proj bias added in f32 BEFORE the cast to the output dtype (bf16 parity).
    o_ref[...] = (out + b2_ref[0]).astype(o_ref.dtype)


@functools.partial(jax.jit, static_argnames=("tm", "mxu_bf16"))
def mlp_head(features, w1, b1, w2, b2, *, tm=None, mxu_bf16=True):
    """features: [..., D] -> [..., 1]  (PyTorch MLPHead forward, eval mode).

    w1: [D, D]  dense.weight.T (stored [in, out]);  b1: [D]
    w2: any shape with D elements (out_proj weight);  b2: [1] / scalar
    mxu_bf16=True runs the DxD matmul on the MXU in bf16 with f32 accumulation
    (~1e-2 relative deviation from PyTorch's f32 Linear); set False for strict
    f32 parity at lower throughput.
    """
    orig_shape = features.shape
    d_model = orig_shape[-1]
    x2d = features.reshape(-1, d_model)          # [N, D]
    n_rows = x2d.shape[0]

    x_bytes = jnp.dtype(x2d.dtype).itemsize     # bf16 features keep a bf16 HBM stream
    w1_dtype = jnp.bfloat16 if mxu_bf16 else jnp.float32
    w1_bytes = jnp.dtype(w1_dtype).itemsize
    out_bytes = jnp.dtype(features.dtype).itemsize

    vmem_limit = _vmem_limit_bytes()
    tm_eff = _pick_tile_rows(n_rows, d_model, x_bytes, w1_bytes, vmem_limit, tm)
    n_tiles = pl.cdiv(n_rows, tm_eff)

    w1_c = w1.astype(w1_dtype)                               # resident MXU operand
    b1_row = b1.reshape(1, d_model).astype(jnp.float32)
    w2_row = jnp.asarray(w2, jnp.float32).reshape(1, d_model)
    b2_s = jnp.asarray(b2, jnp.float32).reshape(1)

    cost = pl.CostEstimate(
        flops=2 * n_rows * d_model * d_model + 4 * n_rows * d_model,
        transcendentals=n_rows * d_model,
        bytes_accessed=(n_rows * d_model * x_bytes
                        + d_model * d_model * w1_bytes
                        + 2 * d_model * 4
                        + n_rows * out_bytes),
    )

    out = pl.pallas_call(
        _mlp_head_kernel,
        out_shape=jax.ShapeDtypeStruct((n_rows, 1), features.dtype),
        grid_spec=pltpu.PrefetchScalarGridSpec(
            num_scalar_prefetch=0,
            grid=(n_tiles,),
            in_specs=[
                pl.BlockSpec((tm_eff, d_model), lambda i: (i, 0)),     # x row tile (streamed)
                pl.BlockSpec((d_model, d_model), lambda i: (0, 0)),    # W1 (grid-invariant)
                pl.BlockSpec((1, d_model), lambda i: (0, 0)),          # b1
                pl.BlockSpec((1, d_model), lambda i: (0, 0)),          # w2 row
                pl.BlockSpec(memory_space=pltpu.MemorySpace.SMEM),     # b2 scalar
            ],
            out_specs=pl.BlockSpec((tm_eff, 1), lambda i: (i, 0)),
        ),
        compiler_params=pltpu.CompilerParams(
            dimension_semantics=("parallel",),     # shard row tiles across TCs (v7x)
            vmem_limit_bytes=vmem_limit,           # generation-aware limit
        ),
        cost_estimate=cost,
    )(x2d, w1_c, b1_row, w2_row, b2_s)

    return out.reshape(*orig_shape[:-1], 1)


if __name__ == "__main__":
    # Small shapes consistent with the module: batch=2, seq=8, d_model=32.
    batch, seq, d_model = 2, 8, 32

    key = jax.random.PRNGKey(0)
    k_x, k_w1, k_b1, k_w2, k_b2 = jax.random.split(key, 5)

    features = jax.random.normal(k_x, (batch, seq, d_model), dtype=jnp.float32)

    # Deterministic "Linear" parameter init (W1 stored as [in, out], i.e. weight.T).
    lim1 = 1.0 / jnp.sqrt(d_model)
    w1 = jax.random.uniform(k_w1, (d_model, d_model), jnp.float32, -lim1, lim1)
    b1 = jax.random.uniform(k_b1, (d_model,), jnp.float32, -lim1, lim1)
    w2 = jax.random.uniform(k_w2, (d_model, 1), jnp.float32, -lim1, lim1)
    b2 = jax.random.uniform(k_b2, (1,), jnp.float32, -lim1, lim1)

    x2d = features.reshape(-1, d_model)

    # --- default bf16-MXU path (reference with matching matmul precision) ---
    out = jax.block_until_ready(mlp_head(features, w1, b1, w2, b2))
    assert out.shape == (batch, seq, 1), out.shape
    h_bf = jnp.tanh(
        jnp.dot(x2d.astype(jnp.bfloat16), w1.astype(jnp.bfloat16),
                preferred_element_type=jnp.float32)
        + b1[None, :])
    ref_bf = (h_bf @ w2 + b2).reshape(batch, seq, 1)
    err_bf = float(jnp.max(jnp.abs(out - ref_bf)))
    assert jnp.allclose(out, ref_bf, atol=5e-3, rtol=5e-3), err_bf

    # --- strict-parity f32 fallback path ---
    out_f32 = jax.block_until_ready(mlp_head(features, w1, b1, w2, b2, mxu_bf16=False))
    h_f32 = jnp.tanh(
        jnp.dot(x2d, w1, precision=jax.lax.Precision.HIGHEST) + b1[None, :])
    ref_f32 = (h_f32 @ w2 + b2).reshape(batch, seq, 1)
    err_f32 = float(jnp.max(jnp.abs(out_f32 - ref_f32)))
    assert jnp.allclose(out_f32, ref_f32, atol=1e-3, rtol=1e-3), err_f32

    print("KERNEL_OK")
</pallas_src>

<mosaic_0001>
module attributes {stable_mosaic.version = 11 : i64} {
  func.func @_mlp_head_kernel(%arg0: i32, %arg1: memref<8x32xf32, #tpu.memory_space<vmem>>, %arg2: memref<32x32xbf16, #tpu.memory_space<vmem>>, %arg3: memref<1x32xf32, #tpu.memory_space<vmem>>, %arg4: memref<1x32xf32, #tpu.memory_space<vmem>>, %arg5: memref<1xf32, #tpu.memory_space<smem>>, %arg6: memref<8x1xf32, #tpu.memory_space<vmem>>) attributes {dimension_semantics = [#tpu.dimension_semantics<parallel>], iteration_bounds = array<i64: 2>, scalar_prefetch = 0 : i64, scratch_operands = 0 : i64, tpu.core_type = #tpu.core_type<tc>, window_params = [{transform_indices = @transform_0, window_bounds = array<i64: 8, 32>}, {pipeline_mode = #tpu.pipeline_mode<synchronous>, transform_indices = @transform_1, window_bounds = array<i64: 32, 32>}, {pipeline_mode = #tpu.pipeline_mode<synchronous>, transform_indices = @transform_2, window_bounds = array<i64: 1, 32>}, {pipeline_mode = #tpu.pipeline_mode<synchronous>, transform_indices = @transform_3, window_bounds = array<i64: 1, 32>}, {transform_indices = @transform_4, window_bounds = array<i64: 1>}, {transform_indices = @transform_5, window_bounds = array<i64: 8, 1>}]} {
    %c0 = arith.constant 0 : index
    %c0_0 = arith.constant 0 : index
    %0 = vector.load %arg1[%c0, %c0_0] : memref<8x32xf32, #tpu.memory_space<vmem>>, vector<8x32xf32>
    %1 = arith.truncf %0 : vector<8x32xf32> to vector<8x32xbf16>
    %c0_1 = arith.constant 0 : index
    %c0_2 = arith.constant 0 : index
    %2 = vector.load %arg2[%c0_1, %c0_2] : memref<32x32xbf16, #tpu.memory_space<vmem>>, vector<32x32xbf16>
    %cst = arith.constant dense<0.000000e+00> : vector<8x32xf32>
    %3 = tpu.matmul %1, %2, %cst {dimension_numbers = #tpu.dot_dimension_numbers<[1], [0], [0], [1], [0, 0, 1, 1], [], []>} : vector<8x32xbf16>, vector<32x32xbf16>, vector<8x32xf32> -> vector<8x32xf32>
    %c0_3 = arith.constant 0 : index
    %c0_4 = arith.constant 0 : index
    %4 = vector.load %arg3[%c0_3, %c0_4] : memref<1x32xf32, #tpu.memory_space<vmem>>, vector<1x32xf32>
    %5 = vector.broadcast %4 : vector<1x32xf32> to vector<8x32xf32>
    %6 = arith.addf %3, %5 : vector<8x32xf32>
    %7 = math.tanh %6 : vector<8x32xf32>
    %c0_5 = arith.constant 0 : index
    %c0_6 = arith.constant 0 : index
    %8 = vector.load %arg4[%c0_5, %c0_6] : memref<1x32xf32, #tpu.memory_space<vmem>>, vector<1x32xf32>
    %9 = vector.broadcast %8 : vector<1x32xf32> to vector<8x32xf32>
    %10 = arith.mulf %7, %9 : vector<8x32xf32>
    %cst_7 = arith.constant dense<0.000000e+00> : vector<8xf32>
    %11 = vector.multi_reduction <add>, %10, %cst_7 [1] : vector<8x32xf32> to vector<8xf32>
    %12 = vector.shape_cast %11 : vector<8xf32> to vector<8x1xf32>
    %c0_8 = arith.constant 0 : index
    %13 = memref.load %arg5[%c0_8] : memref<1xf32, #tpu.memory_space<smem>>
    %14 = vector.broadcast %13 : f32 to vector<8x1xf32>
    %15 = arith.addf %12, %14 : vector<8x1xf32>
    %c0_9 = arith.constant 0 : index
    %c0_10 = arith.constant 0 : index
    %16 = vector.load %arg6[%c0_9, %c0_10] : memref<8x1xf32, #tpu.memory_space<vmem>>, vector<8x1xf32>
    tpu.vector_store %arg6[%c0_9, %c0_10], %15 {strides = array<i32>} : memref<8x1xf32, #tpu.memory_space<vmem>>, vector<8x1xf32>,
    return
  }
  func.func @transform_0(%arg0: i32) -> (i32, i32) {
    %c0_i32 = arith.constant 0 : i32
    %c0_i32_0 = arith.constant 0 : i32
    return %arg0, %c0_i32 : i32, i32
  }
  func.func @transform_1(%arg0: i32) -> (i32, i32) {
    %c0_i32 = arith.constant 0 : i32
    %c0_i32_0 = arith.constant 0 : i32
    %c0_i32_1 = arith.constant 0 : i32
    return %c0_i32, %c0_i32_0 : i32, i32
  }
  func.func @transform_2(%arg0: i32) -> (i32, i32) {
    %c0_i32 = arith.constant 0 : i32
    %c0_i32_0 = arith.constant 0 : i32
    %c0_i32_1 = arith.constant 0 : i32
    return %c0_i32, %c0_i32_0 : i32, i32
  }
  func.func @transform_3(%arg0: i32) -> (i32, i32) {
    %c0_i32 = arith.constant 0 : i32
    %c0_i32_0 = arith.constant 0 : i32
    %c0_i32_1 = arith.constant 0 : i32
    return %c0_i32, %c0_i32_0 : i32, i32
  }
  func.func @transform_4(%arg0: i32) -> i32 {
    %c0_i32 = arith.constant 0 : i32
    %c0_i32_0 = arith.constant 0 : i32
    return %c0_i32 : i32
  }
  func.func @transform_5(%arg0: i32) -> (i32, i32) {
    %c0_i32 = arith.constant 0 : i32
    %c0_i32_0 = arith.constant 0 : i32
    return %arg0, %c0_i32 : i32, i32
  }
}

</mosaic_0001>

<bundles_post_ra>
// kernel: mlp_head.1
= control target key start
LH: loop header
LB: loop body
LE: loop exit
PB: predicated region body
PF: predicated region fallthrough
CT: control target
= control target key end

     0   :  { %s443_s20 = smov 0   ;;  %s472_s0 = inlined_call_operand.vmem [shape: f32[16,32], index: 0, kind: input, shape index: {}]   ;;  %s473_s1 = inlined_call_operand.vmem [shape: bf16[32,32], index: 1, kind: input, shape index: {}]   ;;  %s474_s2 = inlined_call_operand.vmem [shape: f32[1,32], index: 2, kind: input, shape index: {}]   ;;  %s475_s3 = inlined_call_operand.vmem [shape: f32[1,32], index: 3, kind: input, shape index: {}]   ;;  %s476_s4 = inlined_call_operand.<no memory space> [shape: f32[1], index: 4, kind: input, shape index: {}]   ;;  %s477_s5 = inlined_call_operand.vmem [shape: f32[16,1], index: 5, kind: output, shape index: {}]  }
   0x1   :  { %10 = sst [smem:[#allocation2]] %s476_s4 }
   0x2 LB: > { %s361_s21 = sadd.s32 4294967295, %s406_s20   ;;  %p365_p0 = scmp.ge.s32.totalorder %s406_s20, 1  ;;  %s406_s20 = sphi %s443_s20, %s16_s20  }
   0x3   : > { %p187_p1 = scmp.lt.s32.totalorder %s406_s20, 3 }
   0x5   : > { %p188_p2 = pnand %p365_p0, %p187_p1 }
   0x6   : > { %v396_v0 = vld [vmem:[%s473_s1] sm:$0xff] (!%p188_p2)   ;;  %v408_v1 = vmov (!%p188_p2), 0.0   ;;  %v397_v2 = vld [vmem:[%s473_s1 + $0x8] sm:$0xff] (!%p188_p2)   ;;  %vm409_vm0 = vmmov (!%p188_p2), 0   ;;  %p213_p3 = scmp.lt.s32.totalorder (!%p188_p2), %s361_s21, 1  ;;  %vm247_vm1 = vcmask (!%p188_p2), 261120  }
   0x7   : > { %191 = sbr.rel (%p188_p2) target bundleno = 393 (0x189), region = 40  ;;  %378 = vmatprep.subr.bf16.mxu0 (!%p188_p2), %v408_v1  ;;  %382 = vmatprep.mubr.msk.bf16.mxu0 (!%p188_p2), %vm409_vm0, %v408_v1  ;;  %v368_v5 = vld [vmem:[%s474_s2] ss:$0 sm:$0xff] (!%p188_p2)  ;;  %s303_s8 = sld [smem:[#allocation2]] (!%p188_p2)  ;;  %vm306_vm2 = vcmask (!%p188_p2), 7168  }
   0x8   : > { %379 = vmatpush3.bf16.msra.mxu0 (!%p188_p2), %v396_v0  ;;  %v372_v11 = vld [vmem:[%s475_s3] ss:$0 sm:$0xff] (!%p188_p2) }
   0x9   : > { %380 = vmatprep.subr.bf16.mxu0 (!%p188_p2), %v408_v1 }
   0xc   : > { %381 = vmatpush3.bf16.msra.mxu0 (!%p188_p2), %v397_v2 }
   0xd   : > { %v304_v15 = vstv (!%p188_p2), %s303_s8 }
   0xe   : > { %s479_s21 = smov (!%p213_p3, %s361_s21), 1 }
   0xf   : > { %s366_s25 = sshll.u32 %s479_s21, 3 }
  0x10   : > { %s216_s28 = scalar_lea.vmem %s472_s0, %s366_s25  ;;  %s220_s11 = scalar_lea.vmem %s477_s5, %s366_s25 }
  0x11   : > { %v222_v3 = vld [vmem:[%s216_s28] sm:$0xff] }
  0x12   : > { %v223_v4 = vpack.c.bf16 %v222_v3, %v222_v3 }
  0x14   : > { %383 = vmatmul.mubr.msk.bf16.vlgmr.msra.gmra.mrb[0].mxu0 %vm247_vm1, %v223_v4 }
  0xe7   : > { %v285_v6 = vpop.f32.mrb[0].mxu0 }
  0xe8   : > { %v286_v7 = vadd.f32 %v368_v5, %v285_v6  ;;  %v384_v8 = vpop.f32.mrb[1].mxu0 }
  0xe9   : > { %v288_v9 = vpop.f32.mrb[2].mxu0 }
  0xea   : > { %398 = vtanh.f32 %v286_v7  ;;  %v385_v10 = vpop.f32.mrb[3].mxu0 }
  0xf4   : > { %v399_v12 = vpop.eup %398 }
  0xf5   : > { %v299_v13 = vmul.f32 %v399_v12, %v372_v11 }
  0xf7   : > { %v300_v14 = vsel %vm247_vm1, %v299_v13, 0.0 }
  0xf8   : > { %301 = vadd.xlane.f32.xlu0 %v300_v14 }
 0x185   : > { %v302_v16 = vpop.xlane.xlu0 %301 }
 0x186   : > { %v305_v17 = vadd.f32 %v304_v15, %v302_v16 }
 0x188   : > { %307 = vst.msk [vmem:[%s220_s11] sm:$0xff] %vm306_vm2, %v305_v17 }
 0x189 PF: > { %s16_s20 = sadd.s32 1, %s406_s20  }
 0x18a   : > { %p13_p4 = scmp.ge.s32.totalorder %s16_s20, 4  }
 0x18c   :  { %15 = sbr.rel (!%p13_p4) target bundleno = 2 (0x2), region = 70 }

</bundles_post_ra>
